<compile_context>
chip_gen: v7x
topology: tpu7x:2x2x1
jax: 0.10.0
libtpu: 0.0.40
codegen_flags: <defaults>
</compile_context>

<pallas_src>
import jax
import jax.numpy as jnp
from jax.experimental import pallas as pl
from jax.experimental.pallas import tpu as pltpu

INPUT_SIZE = 9
HIDDEN_SIZE = 3
OUTPUT_SIZE = 9

LANE = 128        # TPU lane width (batch axis granularity in feature-major)
MAX_TILE = 2048   # max lanes (batch elements) per grid step


def _cdiv(a, b):
    return -(-a // b)


def _choose_tiling(batch):
    """Static (padded_batch, lane_tile) for a given batch size.
    Tiny batches: pad only to the 128-lane minimum, single grid step.
    Larger batches: >=2 grid steps (v7x megacore sharding), <=MAX_TILE lanes
    per step; tile is then shrunk to the smallest lane multiple that keeps the
    same step count, to minimize batch padding."""
    b128 = _cdiv(batch, LANE) * LANE
    if b128 <= LANE:
        return LANE, LANE
    tile = min(MAX_TILE, max(LANE, (b128 // (2 * LANE)) * LANE))
    n = _cdiv(b128, tile)
    tile = _cdiv(_cdiv(b128, n), LANE) * LANE
    return n * tile, tile


def _mlp_kernel(x_ref, w1_ref, b1_ref, w2_ref, b2_ref, o_ref):
    # Feature-major: x_ref (IN, TILE).  PyTorch (out, in) weight layout is
    # already the right orientation here: h = W1 @ x, y = W2 @ h.
    h = jnp.dot(w1_ref[...], x_ref[...],
                preferred_element_type=jnp.float32)        # (H, TILE), K=9
    h = jnp.tanh(h + b1_ref[...])                          # (3,1) bias lane-broadcast
    y = jnp.dot(w2_ref[...], h,
                preferred_element_type=jnp.float32)        # (OUT, TILE), K=3
    o_ref[...] = jnp.maximum(y + b2_ref[...], 0.0).astype(o_ref.dtype)


def prepare_params(w1, b1, w2, b2):
    """One-time prep: cast to f32 and reshape biases to column vectors.
    No transpose and no feature padding needed (feature-major kernel consumes
    PyTorch's (out_features, in_features) layout directly)."""
    return (jnp.asarray(w1, jnp.float32),
            jnp.asarray(b1, jnp.float32).reshape(HIDDEN_SIZE, 1),
            jnp.asarray(w2, jnp.float32),
            jnp.asarray(b2, jnp.float32).reshape(OUTPUT_SIZE, 1))


def _net_forward_impl(x, w1, b1_col, w2, b2_col):
    B = x.shape[0]
    b_pad, tile = _choose_tiling(B)        # static Python ints at trace time
    n_tiles = b_pad // tile

    # Feature-major activations: batch -> lanes, features -> sublanes.
    # Only the batch axis is padded; padded columns are sliced off below.
    x_fm = jnp.pad(x.astype(jnp.float32).T, ((0, 0), (0, b_pad - B)))

    out_fm = pl.pallas_call(
        _mlp_kernel,
        out_shape=jax.ShapeDtypeStruct((OUTPUT_SIZE, b_pad), jnp.float32),
        grid_spec=pl.GridSpec(
            grid=(n_tiles,),
            in_specs=[
                pl.BlockSpec((INPUT_SIZE, tile), lambda i: (0, i)),          # x tile
                pl.BlockSpec((HIDDEN_SIZE, INPUT_SIZE), lambda i: (0, 0)),   # W1 (resident)
                pl.BlockSpec((HIDDEN_SIZE, 1), lambda i: (0, 0)),            # b1 (resident)
                pl.BlockSpec((OUTPUT_SIZE, HIDDEN_SIZE), lambda i: (0, 0)),  # W2 (resident)
                pl.BlockSpec((OUTPUT_SIZE, 1), lambda i: (0, 0)),            # b2 (resident)
            ],
            out_specs=pl.BlockSpec((OUTPUT_SIZE, tile), lambda i: (0, i)),
        ),
        compiler_params=pltpu.CompilerParams(
            dimension_semantics=("parallel",)),   # v7x: shard batch steps over 2 TCs
    )(x_fm, w1, b1_col, w2, b2_col)

    return out_fm[:, :B].T


# Jit so transpose/pad + kernel + slice/transpose compile into one executable.
net_forward = jax.jit(_net_forward_impl)


def init_params(key):
    """Deterministic init mimicking PyTorch nn.Linear default
    (uniform in +/- 1/sqrt(fan_in)); returns PyTorch-layout (out, in) weights."""
    k1, k2, k3, k4 = jax.random.split(key, 4)
    bound1 = 1.0 / jnp.sqrt(jnp.float32(INPUT_SIZE))
    bound2 = 1.0 / jnp.sqrt(jnp.float32(HIDDEN_SIZE))
    w1 = jax.random.uniform(k1, (HIDDEN_SIZE, INPUT_SIZE), jnp.float32,
                            -bound1, bound1)
    b1 = jax.random.uniform(k2, (HIDDEN_SIZE,), jnp.float32, -bound1, bound1)
    w2 = jax.random.uniform(k3, (OUTPUT_SIZE, HIDDEN_SIZE), jnp.float32,
                            -bound2, bound2)
    b2 = jax.random.uniform(k4, (OUTPUT_SIZE,), jnp.float32, -bound2, bound2)
    return w1, b1, w2, b2


if __name__ == "__main__":
    key = jax.random.PRNGKey(0)
    kx, kp = jax.random.split(key)

    batch = 4
    x = jax.random.normal(kx, (batch, INPUT_SIZE), jnp.float32)
    w1, b1, w2, b2 = init_params(kp)

    # One-time cached parameter prep (f32 cast + bias column reshape).
    params = prepare_params(w1, b1, w2, b2)

    out = net_forward(x, *params)
    out = jax.block_until_ready(out)

    # Pure-JAX reference (PyTorch semantics: x @ W^T + b).
    ref = jnp.maximum(jnp.tanh(x @ w1.T + b1) @ w2.T + b2, 0.0)
    assert out.shape == (batch, OUTPUT_SIZE)
    assert jnp.allclose(out, ref, atol=1e-5, rtol=1e-4)

    # Also exercise the multi-step (multi-tile) batch-grid path.
    big_batch = 4 * LANE + 37     # -> several 128-lane grid steps
    xb = jax.random.normal(kx, (big_batch, INPUT_SIZE), jnp.float32)
    outb = jax.block_until_ready(net_forward(xb, *params))
    refb = jnp.maximum(jnp.tanh(xb @ w1.T + b1) @ w2.T + b2, 0.0)
    assert outb.shape == (big_batch, OUTPUT_SIZE)
    assert jnp.allclose(outb, refb, atol=1e-5, rtol=1e-4)

    print("KERNEL_OK")
</pallas_src>

<mosaic_0001>
module attributes {stable_mosaic.version = 11 : i64} {
  func.func @_mlp_kernel(%arg0: i32, %arg1: memref<9x128xf32, #tpu.memory_space<vmem>>, %arg2: memref<3x9xf32, #tpu.memory_space<vmem>>, %arg3: memref<3x1xf32, #tpu.memory_space<vmem>>, %arg4: memref<9x3xf32, #tpu.memory_space<vmem>>, %arg5: memref<9x1xf32, #tpu.memory_space<vmem>>, %arg6: memref<9x128xf32, #tpu.memory_space<vmem>>) attributes {dimension_semantics = [#tpu.dimension_semantics<parallel>], iteration_bounds = array<i64: 1>, scalar_prefetch = 0 : i64, scratch_operands = 0 : i64, tpu.core_type = #tpu.core_type<tc>, window_params = [{transform_indices = @transform_0, window_bounds = array<i64: 9, 128>}, {pipeline_mode = #tpu.pipeline_mode<synchronous>, transform_indices = @transform_1, window_bounds = array<i64: 3, 9>}, {pipeline_mode = #tpu.pipeline_mode<synchronous>, transform_indices = @transform_2, window_bounds = array<i64: 3, 1>}, {pipeline_mode = #tpu.pipeline_mode<synchronous>, transform_indices = @transform_3, window_bounds = array<i64: 9, 3>}, {pipeline_mode = #tpu.pipeline_mode<synchronous>, transform_indices = @transform_4, window_bounds = array<i64: 9, 1>}, {transform_indices = @transform_5, window_bounds = array<i64: 9, 128>}]} {
    %c0 = arith.constant 0 : index
    %c0_0 = arith.constant 0 : index
    %0 = vector.load %arg2[%c0, %c0_0] : memref<3x9xf32, #tpu.memory_space<vmem>>, vector<3x9xf32>
    %c0_1 = arith.constant 0 : index
    %c0_2 = arith.constant 0 : index
    %1 = vector.load %arg1[%c0_1, %c0_2] : memref<9x128xf32, #tpu.memory_space<vmem>>, vector<9x128xf32>
    %cst = arith.constant dense<0.000000e+00> : vector<3x128xf32>
    %2 = tpu.matmul %0, %1, %cst {dimension_numbers = #tpu.dot_dimension_numbers<[1], [0], [0], [1], [0, 0, 1, 1], [], []>} : vector<3x9xf32>, vector<9x128xf32>, vector<3x128xf32> -> vector<3x128xf32>
    %c0_3 = arith.constant 0 : index
    %c0_4 = arith.constant 0 : index
    %3 = vector.load %arg3[%c0_3, %c0_4] : memref<3x1xf32, #tpu.memory_space<vmem>>, vector<3x1xf32>
    %4 = vector.broadcast %3 : vector<3x1xf32> to vector<3x128xf32>
    %5 = arith.addf %2, %4 : vector<3x128xf32>
    %6 = math.tanh %5 : vector<3x128xf32>
    %c0_5 = arith.constant 0 : index
    %c0_6 = arith.constant 0 : index
    %7 = vector.load %arg4[%c0_5, %c0_6] : memref<9x3xf32, #tpu.memory_space<vmem>>, vector<9x3xf32>
    %cst_7 = arith.constant dense<0.000000e+00> : vector<9x128xf32>
    %8 = tpu.matmul %7, %6, %cst_7 {dimension_numbers = #tpu.dot_dimension_numbers<[1], [0], [0], [1], [0, 0, 1, 1], [], []>} : vector<9x3xf32>, vector<3x128xf32>, vector<9x128xf32> -> vector<9x128xf32>
    %c0_8 = arith.constant 0 : index
    %c0_9 = arith.constant 0 : index
    %9 = vector.load %arg5[%c0_8, %c0_9] : memref<9x1xf32, #tpu.memory_space<vmem>>, vector<9x1xf32>
    %10 = vector.broadcast %9 : vector<9x1xf32> to vector<9x128xf32>
    %11 = arith.addf %8, %10 : vector<9x128xf32>
    %cst_10 = arith.constant 0.000000e+00 : f32
    %12 = vector.broadcast %cst_10 : f32 to vector<9x128xf32>
    %13 = arith.maximumf %11, %12 : vector<9x128xf32>
    %c0_11 = arith.constant 0 : index
    %c0_12 = arith.constant 0 : index
    %14 = vector.load %arg6[%c0_11, %c0_12] : memref<9x128xf32, #tpu.memory_space<vmem>>, vector<9x128xf32>
    tpu.vector_store %arg6[%c0_11, %c0_12], %13 {strides = array<i32>} : memref<9x128xf32, #tpu.memory_space<vmem>>, vector<9x128xf32>,
    return
  }
  func.func @transform_0(%arg0: i32) -> (i32, i32) {
    %c0_i32 = arith.constant 0 : i32
    %c0_i32_0 = arith.constant 0 : i32
    return %c0_i32, %arg0 : i32, i32
  }
  func.func @transform_1(%arg0: i32) -> (i32, i32) {
    %c0_i32 = arith.constant 0 : i32
    %c0_i32_0 = arith.constant 0 : i32
    %c0_i32_1 = arith.constant 0 : i32
    return %c0_i32, %c0_i32_0 : i32, i32
  }
  func.func @transform_2(%arg0: i32) -> (i32, i32) {
    %c0_i32 = arith.constant 0 : i32
    %c0_i32_0 = arith.constant 0 : i32
    %c0_i32_1 = arith.constant 0 : i32
    return %c0_i32, %c0_i32_0 : i32, i32
  }
  func.func @transform_3(%arg0: i32) -> (i32, i32) {
    %c0_i32 = arith.constant 0 : i32
    %c0_i32_0 = arith.constant 0 : i32
    %c0_i32_1 = arith.constant 0 : i32
    return %c0_i32, %c0_i32_0 : i32, i32
  }
  func.func @transform_4(%arg0: i32) -> (i32, i32) {
    %c0_i32 = arith.constant 0 : i32
    %c0_i32_0 = arith.constant 0 : i32
    %c0_i32_1 = arith.constant 0 : i32
    return %c0_i32, %c0_i32_0 : i32, i32
  }
  func.func @transform_5(%arg0: i32) -> (i32, i32) {
    %c0_i32 = arith.constant 0 : i32
    %c0_i32_0 = arith.constant 0 : i32
    return %c0_i32, %arg0 : i32, i32
  }
}

</mosaic_0001>

<bundles_post_ra>
// kernel: _net_forward_impl.1
= control target key start
LH: loop header
LB: loop body
LE: loop exit
PB: predicated region body
PF: predicated region fallthrough
CT: control target
= control target key end

     0   :  { %vm33_vm0 = vcmask 1040384   ;;  %v252_v0 = vmov 0.0|0.0   ;;  %vm253_vm1 = vmmov 1   ;;  %vm254_vm3 = vmmov 0   ;;  %s317_s0 = inlined_call_operand.vmem [shape: f32[9,128], index: 0, kind: input, shape index: {}]   ;;  %s318_s2 = inlined_call_operand.vmem [shape: f32[3,1], index: 2, kind: input, shape index: {}]   ;;  %s319_s1 = inlined_call_operand.vmem [shape: f32[3,9], index: 1, kind: input, shape index: {}]   ;;  %s320_s4 = inlined_call_operand.vmem [shape: f32[9,1], index: 4, kind: input, shape index: {}]   ;;  %s321_s3 = inlined_call_operand.vmem [shape: f32[9,3], index: 3, kind: input, shape index: {}]   ;;  %s322_s5 = inlined_call_operand.vmem [shape: f32[9,128], index: 5, kind: output, shape index: {}]  }
   0x1   :  { %239 = vmatprep.subr.bf16.mxu0 %v252_v0  ;;  %v21_v1 = vld [vmem:[%s317_s0] sm:$0xff]  ;;  %v22_v2 = vld [vmem:[%s317_s0 + $0x8] sm:$0x1]  ;;  %vm241_vm2 = vmpackc.low %vm33_vm0, %vm253_vm1  ;;  %v255_v4 = vmov 0.0   ;;  %v256_v5 = vmov 0   ;;  %vm29_vm4 = vcmask 72704  }
   0x2   :  { %v240_v3 = vpack.c.bf16 %v22_v2, %v21_v1  ;;  %231 = vmatprep.mubr.msk.f32.mxu0 %vm254_vm3, %v255_v4  ;;  %248 = vset.pattern.permute.xlu0 %v256_v5  ;;  %v23_v6 = vld [vmem:[%s318_s2] sm:$0x7]  ;;  %vm122_vm5 = vcmask 23552   ;;  %v111_v10 = vld [vmem:[%s320_s4 + $0x8] sm:$0x1]  ;;  %vm129_vm6 = vcmask 1042432  }
   0x3   :  { %26 = vperm.xlu0 %248, %v23_v6   ;;  %249 = vset.pattern.permute.xlu1 %v256_v5  ;;  %v20_v7 = vld [vmem:[%s319_s1] sm:$0x7]  ;;  %v109_v16 = vld [vmem:[%s321_s3 + $0x8] sm:$0x1] }
   0x4   :  { %242 = vmatpush3.bf16.msk.msra.mxu0 %vm241_vm2, %v240_v3  ;;  %v110_v8 = vld [vmem:[%s320_s4] sm:$0xff]  ;;  %119 = vperm.xlu1 %249, %v111_v10  }
   0x5   :  { %v108_v9 = vld [vmem:[%s321_s3] sm:$0xff] }
   0x6   :  { %236 = vmatprep.mubr.msk.f32.mxu1 %vm122_vm5, %v108_v9 }
   0x7   :  { %232 = vmatmul.mubr.msk.f32.vlgmr.msra.gmra.mrb[0].mxu0 %vm29_vm4, %v20_v7  ;;  %114 = vperm.xlu0 %248, %v110_v8  }
  0x82   :  { %v27_v11 = vpop.permute.xlu0 %26 }
  0x83   :  { %v120_v17 = vpop.permute.xlu1 %119 }
  0x86   :  { %v115_v19 = vpop.permute.xlu0 %114 }
  0xda   :  { %v103_v12 = vpop.f32.mrb[0].mxu0 }
  0xdb   :  { %v104_v13 = vadd.f32 %v103_v12, %v27_v11  ;;  %v233_v14 = vpop.f32.mrb[1].mxu0 }
  0xdd   :  { %250 = vtanh.f32 %v104_v13 }
  0xe7   :  { %v251_v15 = vpop.eup %250 }
  0xe8   :  { %234 = vmatprep.subr.msk.mxu1 %vm129_vm6, %v251_v15 }
  0xe9   :  { %235 = vmatpush3.msk.msra.mxu1 %vm129_vm6, %v251_v15 }
  0xea   :  { %237 = vmatmul.mubr.msk.f32.vlgmr.msra.gmra.mrb[0].mxu1 %vm122_vm5, %v109_v16 }
 0x1bd   :  { %v238_v18 = vpop.f32.mrb[0].mxu1 }
 0x1be   :  { %v205_v20 = vadd.f32 %v238_v18, %v120_v17  ;;  %v199_v21 = vpop.f32.mrb[1].mxu1 }
 0x1bf   :  { %v200_v22 = vadd.f32 %v199_v21, %v115_v19 }
 0x1c0   :  { %v209_v23 = vmax.f32 %v205_v20, 0.0 }
 0x1c1   :  { %v208_v24 = vmax.f32 %v200_v22, 0.0 }
 0x1c2   :  { %211 = vst [vmem:[%s322_s5 + $0x8] sm:$0x1] %v209_v23 }
 0x1c3   :  { %210 = vst [vmem:[%s322_s5] sm:$0xff] %v208_v24 }

</bundles_post_ra>
